<compile_context>
chip_gen: v6e
topology: v6e:2x2x1
jax: 0.10.0
libtpu: 0.0.40
codegen_flags: <defaults>
</compile_context>

<pallas_src>
import jax
import jax.numpy as jnp
from jax.experimental import pallas as pl
from jax.experimental.pallas import tpu as pltpu


def _translate_kernel(emb_ref, trans_ref, out_ref):
    # emb_ref:   (TM, W)  block of embeddings (lane-dense layout)
    # trans_ref: (1,  W)  resident, tiled translation vector
    # Pure VPU elementwise add; memory-bandwidth bound.
    out_ref[...] = emb_ref[...] + trans_ref[...]


def _round_up(x, m):
    return ((x + m - 1) // m) * m


def translation_operator(embeddings, translation, *, tm_max=512):
    """embeddings + translation  (translation broadcast over the last dim)."""
    *lead, dim = embeddings.shape
    assert translation.shape == (dim,), "translation must have shape (dim,)"

    n = 1
    for d in lead:
        n *= d
    total = n * dim

    # Choose a lane-dense row width W (multiple of dim; multiple of 128 when possible).
    if dim % 128 == 0:
        w = dim                      # already lane-dense
    elif 128 % dim == 0:
        w = 128                      # fold 128//dim vectors per lane-dense row
    else:
        w = dim                      # fallback: full last dim as the block width

    dtype = embeddings.dtype
    trans_w = jnp.tile(translation.astype(dtype), w // dim).reshape(1, w)

    # Rows of the lane-dense layout, padded so blocks tile evenly.
    r_raw = -(-total // w)                       # ceil(total / w)
    r_pad8 = _round_up(max(r_raw, 1), 8)         # sublane alignment
    tm = min(tm_max, r_pad8)                     # rows per grid step (multiple of 8)
    r_final = _round_up(r_pad8, tm)
    padded_total = r_final * w

    emb_flat = embeddings.reshape(-1)
    pad = padded_total - total
    if pad:
        emb_flat = jnp.concatenate(
            [emb_flat, jnp.zeros((pad,), dtype=dtype)], axis=0)
    emb2 = emb_flat.reshape(r_final, w)

    grid = (r_final // tm,)

    out2 = pl.pallas_call(
        _translate_kernel,
        out_shape=jax.ShapeDtypeStruct((r_final, w), dtype),
        grid_spec=pl.GridSpec(
            grid=grid,
            in_specs=[
                # embeddings: one large row-block per grid step
                pl.BlockSpec((tm, w), lambda i: (i, 0)),
                # translation: whole (tiny) table resident in VMEM across the grid
                pl.BlockSpec((1, w), lambda i: (0, 0)),
            ],
            out_specs=pl.BlockSpec((tm, w), lambda i: (i, 0)),
        ),
        compiler_params=pltpu.CompilerParams(
            dimension_semantics=("parallel",),
        ),
    )(emb2, trans_w)

    return out2.reshape(-1)[:total].reshape(*lead, dim)


if __name__ == "__main__":
    # Small shapes consistent with the module's forward: dim=32, embeddings (2, 8, 32).
    dim = 32

    key = jax.random.PRNGKey(0)
    k_emb, k_trans = jax.random.split(key, 2)

    embeddings = jax.random.normal(k_emb, (2, 8, dim), dtype=jnp.float32)
    # The PyTorch module initializes translation to zeros; use deterministic random
    # values so the broadcast-add is actually exercised (synthetic params).
    translation = jax.random.normal(k_trans, (dim,), dtype=jnp.float32)

    out = translation_operator(embeddings, translation)
    out = jax.block_until_ready(out)

    # Reference (plain JAX) check of the PyTorch semantics.
    ref = embeddings + translation
    assert out.shape == embeddings.shape
    assert jnp.allclose(out, ref, atol=1e-6, rtol=1e-6)

    print("KERNEL_OK")
</pallas_src>

<mosaic_0001>
module attributes {stable_mosaic.version = 11 : i64} {
  func.func @_translate_kernel(%arg0: i32, %arg1: memref<8x128xf32, #tpu.memory_space<vmem>>, %arg2: memref<1x128xf32, #tpu.memory_space<vmem>>, %arg3: memref<8x128xf32, #tpu.memory_space<vmem>>) attributes {dimension_semantics = [#tpu.dimension_semantics<parallel>], iteration_bounds = array<i64: 1>, scalar_prefetch = 0 : i64, scratch_operands = 0 : i64, tpu.core_type = #tpu.core_type<tc>, window_params = [{transform_indices = @transform_0, window_bounds = array<i64: 8, 128>}, {pipeline_mode = #tpu.pipeline_mode<synchronous>, transform_indices = @transform_1, window_bounds = array<i64: 1, 128>}, {transform_indices = @transform_2, window_bounds = array<i64: 8, 128>}]} {
    %c0 = arith.constant 0 : index
    %c0_0 = arith.constant 0 : index
    %0 = vector.load %arg1[%c0, %c0_0] : memref<8x128xf32, #tpu.memory_space<vmem>>, vector<8x128xf32>
    %c0_1 = arith.constant 0 : index
    %c0_2 = arith.constant 0 : index
    %1 = vector.load %arg2[%c0_1, %c0_2] : memref<1x128xf32, #tpu.memory_space<vmem>>, vector<1x128xf32>
    %2 = vector.broadcast %1 : vector<1x128xf32> to vector<8x128xf32>
    %3 = arith.addf %0, %2 : vector<8x128xf32>
    %c0_3 = arith.constant 0 : index
    %c0_4 = arith.constant 0 : index
    %4 = vector.load %arg3[%c0_3, %c0_4] : memref<8x128xf32, #tpu.memory_space<vmem>>, vector<8x128xf32>
    tpu.vector_store %arg3[%c0_3, %c0_4], %3 {strides = array<i32>} : memref<8x128xf32, #tpu.memory_space<vmem>>, vector<8x128xf32>,
    return
  }
  func.func @transform_0(%arg0: i32) -> (i32, i32) {
    %c0_i32 = arith.constant 0 : i32
    %c0_i32_0 = arith.constant 0 : i32
    return %arg0, %c0_i32 : i32, i32
  }
  func.func @transform_1(%arg0: i32) -> (i32, i32) {
    %c0_i32 = arith.constant 0 : i32
    %c0_i32_0 = arith.constant 0 : i32
    %c0_i32_1 = arith.constant 0 : i32
    return %c0_i32, %c0_i32_0 : i32, i32
  }
  func.func @transform_2(%arg0: i32) -> (i32, i32) {
    %c0_i32 = arith.constant 0 : i32
    %c0_i32_0 = arith.constant 0 : i32
    return %arg0, %c0_i32 : i32, i32
  }
}

</mosaic_0001>

<bundles_post_ra>
// kernel: tpu_custom_call.1
= control target key start
LH: loop header
LB: loop body
LE: loop exit
PB: predicated region body
PF: predicated region fallthrough
CT: control target
= control target key end

     0   :  { %7 = vsyncpa [#allocation3], 0  ;;  %s122_s0 = inlined_call_operand.hbm [shape: f32[8,128], index: 0, kind: input, shape index: {}]   ;;  %s123_s1 = inlined_call_operand.vmem [shape: f32[1,128], index: 1, kind: input, shape index: {}]   ;;  %s124_s2 = inlined_call_operand.hbm [shape: f32[8,128], index: 2, kind: output, shape index: {}]  }
   0x1   :  { %8 = vsyncpa [#allocation4], 0  ;;  %s96_s9 = smov [#allocation2]  }
   0x2   :  { %s15_s10 = sshll.u32 %s96_s9, 4  ;;  %s16_s10 = int_to_ptr.vmem [resolvable:$true] %s15_s10 }
   0x3   :  { %s60_s11 = scalar_lea.vmem %s16_s10, 128  ;;  %p65_p1 = scmp.lt.s32.totalorder %s16_s10, %s16_s10 }
   0x4   :  { %p61_p0 = scmp.ne.s32.totalorder %s16_s10, %s60_s11  ;;  %p66_p2 = scmp.lt.s32.totalorder %s60_s11, %s60_s11 }
   0x6   :  { %p67_p3 = por %p66_p2, %p65_p1 }
   0x8   :  { %p68_p4 = pnand %p67_p3, %p61_p0 }
   0xa   :  { %71 = shalt.err (!%p68_p4)
}
   0xb   :  { %18 = dma.hbm_to_vmem [thread:$0]  %s122_s0, 128, %s16_s10, [#allocation3]  }
   0xc   :  { %92 = dma.done.wait [#allocation3], 128  }
   0xd   :  { %93 = vsyncadd [#allocation3], 4294967168  ;;  %s97_s14 = smov [#allocation5]   ;;  %v24_v0 = vld [vmem:[#allocation2] sm:$0xff] }
   0xe   :  { %s40_s15 = sshll.u32 %s97_s14, 4  ;;  %v49_v1 = vld [vmem:[%s123_s1] ss:$0 sm:$0xff]  ;;  %s41_s15 = int_to_ptr.vmem [resolvable:$true] %s40_s15 }
   0xf   :  { %v32_v2 = vadd.f32 %v49_v1, %v24_v0  ;;  %s72_s18 = scalar_lea.vmem %s41_s15, 128  ;;  %p77_p6 = scmp.lt.s32.totalorder %s41_s15, %s41_s15 }
  0x10   :  { %p73_p5 = scmp.ne.s32.totalorder %s41_s15, %s72_s18  ;;  %p78_p7 = scmp.lt.s32.totalorder %s72_s18, %s72_s18 }
  0x11   :  { %33 = vst [vmem:[#allocation5] sm:$0xff] %v32_v2 }
  0x12   :  { %p79_p8 = por %p78_p7, %p77_p6 }
  0x14   :  { %p80_p9 = pnand %p79_p8, %p73_p5 }
  0x16   :  { %83 = shalt.err (!%p80_p9)
}
  0x17   :  { %43 = dma.vmem_to_hbm [thread:$0]  %s41_s15, 128, %s124_s2, [#allocation4]  }
  0x18   :  { %94 = dma.done.wait [#allocation4], 128  }
  0x19   :  { %95 = vsyncadd [#allocation4], 4294967168 }
  0x1a   :  { %47 = vsyncpa [#allocation3], 1 }
  0x1b   :  { %48 = vsyncpa [#allocation4], 1 }

</bundles_post_ra>
